<compile_context>
chip_gen: v6e
topology: v6e:2x2x1
jax: 0.10.0
libtpu: 0.0.40
codegen_flags: <defaults>
</compile_context>

<pallas_src>
import jax
import jax.numpy as jnp
from jax import lax
from jax.experimental import pallas as pl
from jax.experimental.pallas import tpu as pltpu

LN_EPS = 1e-6
NEG_INF = -1e9


def group_attention_kernel(a2_ref, b2_ref, wqk_ref, bqk_ref,
                           ctx_ref, nb_ref, fbc_ref, prior_ref,
                           g_ref, na_ref):
    BB, S, _ = prior_ref.shape
    N, D = ctx_ref.shape                 # N = BB * S
    inv_s = 1.0 / S

    # ---- LayerNorm over the whole batch block (torch .std is unbiased) ----
    x = ctx_ref[...]                                          # (N, D)
    mean = jnp.mean(x, axis=-1, keepdims=True)
    var = jnp.sum((x - mean) ** 2, axis=-1, keepdims=True) / (D - 1)
    xn = a2_ref[...] * (x - mean) / (jnp.sqrt(var) + LN_EPS) + b2_ref[...]

    # ---- fused Q|K projection: one (N, D) @ (D, 2D) matmul ----
    qk = jnp.dot(xn, wqk_ref[...], preferred_element_type=jnp.float32) + bqk_ref[...]
    q = qk[:, :D]
    k = qk[:, D:]

    # ---- neighbour scores (only the +/-1 diagonals survive eos & (a+c)) ----
    # host-side biases are 0 / -1e9; invalid edge rows (incl. the roll wrap
    # across batch boundaries inside a block) carry -1e9 and drop out exactly.
    nbv = nb_ref[...]                                         # (N, 4)
    s_up = jnp.sum(q * jnp.roll(k, -1, axis=0), axis=-1, keepdims=True) / D + nbv[:, 0:1]
    s_dn = jnp.sum(q * jnp.roll(k, 1, axis=0), axis=-1, keepdims=True) / D + nbv[:, 1:2]

    # 2-way softmax; exp(-1e9 - finite) underflows to exactly 0, matching the
    # reference's dense softmax on masked entries.
    m2 = jnp.maximum(s_up, s_dn)
    e_up = jnp.exp(s_up - m2)
    e_dn = jnp.exp(s_dn - m2)
    z = e_up + e_dn
    p_up = e_up / z                                           # na_soft[i, i+1]
    p_dn = e_dn / z                                           # na_soft[i, i-1]

    # ---- per-row vectors in (BB, S, 1) sublane layout (free reshapes) ----
    p_up3 = p_up.reshape(BB, S, 1)
    p_dn3 = p_dn.reshape(BB, S, 1)
    fb3 = nbv[:, 2:3].reshape(BB, S, 1)       # 1.0 where the whole row is masked
    psup3 = nbv[:, 3:4].reshape(BB, S, 1)     # prior[i, i+1]

    # na_soft on the +/-1 diagonals, with the all-masked -> uniform 1/S fallback
    ns_up = jnp.where(fb3 != 0.0, inv_s, p_up3)               # na_soft[i, i+1]
    ns_dn = jnp.where(fb3 != 0.0, inv_s, p_dn3)               # na_soft[i, i-1]
    ns_dn_next = jnp.roll(ns_dn, -1, axis=1)                  # na_soft[i+1, i]
    ns_up_prev = jnp.roll(ns_up, 1, axis=1)                   # na_soft[i-1, i]
    a_up3 = ns_up * ns_dn_next           # na_soft[i,i+1] * na_soft[i+1,i]
    a_dn3 = ns_dn * ns_up_prev           # na_soft[i,i-1] * na_soft[i-1,i]

    # ---- prefix sums for g_attn: C[i] = sum_{t<i} log(na[t,t+1] + 1e-9) ----
    na_sup = psup3 + (1.0 - psup3) * jnp.sqrt(a_up3 + 1e-9)   # na[i, i+1]
    i3 = lax.broadcasted_iota(jnp.int32, (BB, S, 1), 1)
    v3 = jnp.where(i3 < S - 1, jnp.log(na_sup + 1e-9), 0.0)
    # exclusive Hillis-Steele scan along the sublane axis (log2(S) roll+adds)
    c_row = jnp.where(i3 >= 1, jnp.roll(v3, 1, axis=1), 0.0)
    shift = 1
    while shift < S:
        c_row = c_row + jnp.where(i3 >= shift, jnp.roll(c_row, shift, axis=1), 0.0)
        shift *= 2

    # ---- structural masks built once at (S, S), broadcast over the block ----
    row2 = lax.broadcasted_iota(jnp.int32, (S, S), 0)
    col2 = lax.broadcasted_iota(jnp.int32, (S, S), 1)
    a_sup2 = col2 == row2 + 1
    c_sub2 = col2 == row2 - 1
    eye2 = col2 == row2

    # the single remaining row->column conversion: C as a (BB, 1, S) vector
    c_col = jnp.sum(jnp.where(eye2, c_row, 0.0), axis=1, keepdims=True)

    # ---- neibor_attn = prior + (1-prior)*sqrt(na_soft * na_soft^T + 1e-9) ----
    # the product is nonzero only on the +/-1 diagonals and on the fb (x) fb
    # background (uniform 1/S rows), so it is rebuilt from row vectors + the
    # host-provided column-oriented fb.
    fb_c = fbc_ref[...]                                       # (BB, 1, S)
    prod = jnp.where(a_sup2, a_up3, 0.0) + jnp.where(c_sub2, a_dn3, 0.0)
    prod = jnp.where((fb3 * fb_c) > 0.0, inv_s * inv_s, prod)
    prior = prior_ref[...]
    na = prior + (1.0 - prior) * jnp.sqrt(prod + 1e-9)
    na_ref[...] = na

    # ---- g_attn: exp(C[m]-C[i]) above / exp(C[i]-C[m]) below the diagonal.
    # C is a (non-increasing) prefix sum of logs, so both are exp(-|C[m]-C[i]|).
    # Diagonal takes na[i,i]; off-diagonal gains the reference's 1e-9 fill.
    g_off = jnp.exp(-jnp.abs(c_col - c_row)) + 1e-9
    g_ref[...] = jnp.where(eye2, na, g_off)


def _vmem_budget_bytes():
    """Per-generation VMEM budget: ~48 MiB on v7x (64 MiB physical), up to
    ~96 MiB on v5e/v6e (128 MiB physical)."""
    cap = 64 * 1024 * 1024                       # conservative (v7x-safe) fallback
    try:
        cap = int(pltpu.get_tpu_info().vmem_capacity_bytes)
    except Exception:
        pass
    return min((cap * 3) // 4, 100 * 1024 * 1024)


def _pick_block_b(batch, seq, d_model, vmem_limit_bytes):
    """Largest divisor of `batch` whose per-step working set fits the VMEM
    budget, while keeping >= 2 grid steps so both v7x TensorCores get work."""
    # Per batch element, per grid step (f32 bytes):
    #   double-buffered I/O: prior + 2 outputs (3*S*S) + context (S*D) + ~5*S
    #   per-row side info, plus ~8 live (S,S) f32 temporaries in the body.
    io = 3 * seq * seq + seq * d_model + 5 * seq
    per_b = 4 * (2 * io + 8 * seq * seq)
    budget = int(vmem_limit_bytes * 0.85)
    max_bb = max(1, budget // per_b)
    if batch >= 2:
        max_bb = min(max_bb, batch // 2)         # >= 2 grid steps (v7x megacore)
    bb = 1
    for cand in range(2, min(batch, max_bb) + 1):
        if batch % cand == 0:
            bb = cand
    return bb


def group_attention(context, eos_mask, prior, params, *, block_b=None):
    """params = (a2, b2, wq_t, bq, wk_t, bk); weights already (in, out)."""
    a2, b2, wq_t, bq, wk_t, bk = params
    B, S, D = context.shape
    # per-row vectors are split (BB*S, 1) -> (BB, S, 1); S must be a sublane
    # multiple for that reshape to stay tile-aligned.
    assert S % 8 == 0, "group_attention kernel assumes S is a multiple of 8"

    vmem_limit = _vmem_budget_bytes()
    BB = _pick_block_b(B, S, D, vmem_limit) if block_b is None else block_b
    assert B % BB == 0
    grid = (B // BB,)

    # (B,S,D) -> (B*S, D): one fused LayerNorm + Q|K matmul per block.
    ctx2 = context.reshape(B * S, D)
    wqk = jnp.concatenate([wq_t, wk_t], axis=1)       # (D, 2D)
    bqk = jnp.concatenate([bq, bk], axis=1)           # (1, 2D)

    # ---- per-row side info (host-side, tiny): only the +/-1 diagonals of
    # eos_mask and prior are ever needed by the kernel. ----
    d_up = jnp.diagonal(eos_mask, offset=1, axis1=1, axis2=2)     # eos[b, i, i+1]
    d_dn = jnp.diagonal(eos_mask, offset=-1, axis1=1, axis2=2)    # eos[b, i+1, i]
    valid_up = jnp.concatenate([d_up != 0, jnp.zeros((B, 1), bool)], axis=1)
    valid_dn = jnp.concatenate([jnp.zeros((B, 1), bool), d_dn != 0], axis=1)
    bias_up = jnp.where(valid_up, 0.0, NEG_INF).astype(jnp.float32)
    bias_dn = jnp.where(valid_dn, 0.0, NEG_INF).astype(jnp.float32)
    fb = jnp.logical_not(valid_up | valid_dn).astype(jnp.float32)  # all-masked rows
    p_sup = jnp.diagonal(prior, offset=1, axis1=1, axis2=2).astype(jnp.float32)
    p_sup = jnp.concatenate([p_sup, jnp.zeros((B, 1), jnp.float32)], axis=1)
    nb = jnp.stack([bias_up, bias_dn, fb, p_sup], axis=-1).reshape(B * S, 4)
    fbc = fb.reshape(B, 1, S)                                     # column-oriented fb

    param_d = pl.BlockSpec((1, D), lambda b: (0, 0))
    mat_spec = pl.BlockSpec((BB, S, S), lambda b: (b, 0, 0))

    return pl.pallas_call(
        group_attention_kernel,
        out_shape=(jax.ShapeDtypeStruct((B, S, S), jnp.float32),
                   jax.ShapeDtypeStruct((B, S, S), jnp.float32)),
        grid=grid,
        in_specs=[param_d, param_d,                               # a2, b2
                  pl.BlockSpec((D, 2 * D), lambda b: (0, 0)),     # fused W_q|W_k
                  pl.BlockSpec((1, 2 * D), lambda b: (0, 0)),     # fused b_q|b_k
                  pl.BlockSpec((BB * S, D), lambda b: (b, 0)),    # context
                  pl.BlockSpec((BB * S, 4), lambda b: (b, 0)),    # row side info
                  pl.BlockSpec((BB, 1, S), lambda b: (b, 0, 0)),  # fb (column form)
                  mat_spec],                                      # prior
        out_specs=(mat_spec, mat_spec),
        compiler_params=pltpu.CompilerParams(
            dimension_semantics=("parallel",),
            vmem_limit_bytes=vmem_limit,
        ),
    )(a2, b2, wqk, bqk, ctx2, nb, fbc, prior)


def group_attention_ref(context, eos_mask, prior, params):
    """Pure-JAX reference mirroring the PyTorch forward."""
    a2, b2, wq_t, bq, wk_t, bk = params
    B, S, D = context.shape
    mean = jnp.mean(context, -1, keepdims=True)
    var = jnp.sum((context - mean) ** 2, -1, keepdims=True) / (D - 1)
    xn = a2 * (context - mean) / (jnp.sqrt(var) + LN_EPS) + b2

    q = xn @ wq_t + bq
    k = xn @ wk_t + bk
    scores = jnp.einsum('bij,bkj->bik', q, k) / D

    a_m = jnp.diag(jnp.ones(S - 1), 1)
    c_m = jnp.diag(jnp.ones(S - 1), -1)
    eye = jnp.eye(S)
    tri = jnp.triu(jnp.ones((S, S), jnp.float32), 0)

    mask = (eos_mask != 0.0) & ((a_m + c_m) != 0.0)
    scores = jnp.where(mask, scores, -1e9)
    na = jax.nn.softmax(scores, axis=-1)
    na = jnp.sqrt(na * jnp.swapaxes(na, -2, -1) + 1e-9)
    na = prior + (1.0 - prior) * na

    t = jnp.where(a_m == 0.0, 0.0, jnp.log(na + 1e-9)) @ tri
    g = jnp.exp(jnp.einsum('ij,bjk->bik', tri, t))
    g = jnp.where((tri - eye) == 0.0, 0.0, g)
    g = g + jnp.swapaxes(g, -2, -1) + jnp.where(eye == 0.0, 1e-9, na)
    return g, na


if __name__ == "__main__":
    B, S, D = 2, 8, 32
    key = jax.random.PRNGKey(0)
    k1, k2, k3, k4, k5, k6, k7 = jax.random.split(key, 7)

    context = jax.random.normal(k1, (B, S, D), jnp.float32)
    eos_mask = jax.random.bernoulli(k2, 0.9, (B, S, S)).astype(jnp.float32)
    # force a couple of fully-masked rows to exercise the uniform-1/S fallback
    # (and the fb x fb off-diagonal background of na_soft * na_soft^T).
    eos_mask = eos_mask.at[0, 3, :].set(0.0)
    eos_mask = eos_mask.at[0, 5, :].set(0.0)
    prior = jax.random.uniform(k3, (B, S, S), jnp.float32)

    # Deterministic parameter init (LayerNorm + two Linears, d_model=D).
    a2 = jnp.ones((1, D), jnp.float32)
    b2 = jnp.zeros((1, D), jnp.float32)
    wq_t = 0.1 * jax.random.normal(k4, (D, D), jnp.float32)   # (in, out)
    bq = 0.1 * jax.random.normal(k5, (1, D), jnp.float32)
    wk_t = 0.1 * jax.random.normal(k6, (D, D), jnp.float32)
    bk = 0.1 * jax.random.normal(k7, (1, D), jnp.float32)
    params = (a2, b2, wq_t, bq, wk_t, bk)

    # TODO(synk): nn.Dropout(0.8) is declared in __init__ but never applied in
    # forward, so it is intentionally omitted here.

    g_attn, neibor_attn = group_attention(context, eos_mask, prior, params)
    jax.block_until_ready((g_attn, neibor_attn))

    g_ref, na_ref_ = group_attention_ref(context, eos_mask, prior, params)
    assert jnp.allclose(neibor_attn, na_ref_, rtol=2e-4, atol=1e-6), \
        float(jnp.max(jnp.abs(neibor_attn - na_ref_)))
    assert jnp.allclose(g_attn, g_ref, rtol=2e-4, atol=1e-6), \
        float(jnp.max(jnp.abs(g_attn - g_ref)))

    print("KERNEL_OK")
</pallas_src>

<mosaic_0001>
module attributes {stable_mosaic.version = 11 : i64} {
  func.func @group_attention_kernel(%arg0: i32, %arg1: memref<1x32xf32, #tpu.memory_space<vmem>>, %arg2: memref<1x32xf32, #tpu.memory_space<vmem>>, %arg3: memref<32x64xf32, #tpu.memory_space<vmem>>, %arg4: memref<1x64xf32, #tpu.memory_space<vmem>>, %arg5: memref<8x32xf32, #tpu.memory_space<vmem>>, %arg6: memref<8x4xf32, #tpu.memory_space<vmem>>, %arg7: memref<1x1x8xf32, #tpu.memory_space<vmem>>, %arg8: memref<1x8x8xf32, #tpu.memory_space<vmem>>, %arg9: memref<1x8x8xf32, #tpu.memory_space<vmem>>, %arg10: memref<1x8x8xf32, #tpu.memory_space<vmem>>) attributes {dimension_semantics = [#tpu.dimension_semantics<parallel>], iteration_bounds = array<i64: 2>, scalar_prefetch = 0 : i64, scratch_operands = 0 : i64, tpu.core_type = #tpu.core_type<tc>, window_params = [{pipeline_mode = #tpu.pipeline_mode<synchronous>, transform_indices = @transform_0, window_bounds = array<i64: 1, 32>}, {pipeline_mode = #tpu.pipeline_mode<synchronous>, transform_indices = @transform_1, window_bounds = array<i64: 1, 32>}, {pipeline_mode = #tpu.pipeline_mode<synchronous>, transform_indices = @transform_2, window_bounds = array<i64: 32, 64>}, {pipeline_mode = #tpu.pipeline_mode<synchronous>, transform_indices = @transform_3, window_bounds = array<i64: 1, 64>}, {transform_indices = @transform_4, window_bounds = array<i64: 8, 32>}, {transform_indices = @transform_5, window_bounds = array<i64: 8, 4>}, {transform_indices = @transform_6, window_bounds = array<i64: 1, 1, 8>}, {transform_indices = @transform_7, window_bounds = array<i64: 1, 8, 8>}, {transform_indices = @transform_8, window_bounds = array<i64: 1, 8, 8>}, {transform_indices = @transform_9, window_bounds = array<i64: 1, 8, 8>}]} {
    %c0 = arith.constant 0 : index
    %c0_0 = arith.constant 0 : index
    %0 = vector.load %arg5[%c0, %c0_0] : memref<8x32xf32, #tpu.memory_space<vmem>>, vector<8x32xf32>
    %cst = arith.constant dense<0.000000e+00> : vector<8xf32>
    %1 = vector.multi_reduction <add>, %0, %cst [1] : vector<8x32xf32> to vector<8xf32>
    %2 = vector.shape_cast %1 : vector<8xf32> to vector<8x1xf32>
    %cst_1 = arith.constant 3.200000e+01 : f32
    %3 = vector.broadcast %cst_1 : f32 to vector<8x1xf32>
    %4 = arith.divf %2, %3 : vector<8x1xf32>
    %5 = vector.broadcast %4 : vector<8x1xf32> to vector<8x32xf32>
    %6 = arith.subf %0, %5 : vector<8x32xf32>
    %7 = arith.mulf %6, %6 : vector<8x32xf32>
    %cst_2 = arith.constant dense<0.000000e+00> : vector<8xf32>
    %8 = vector.multi_reduction <add>, %7, %cst_2 [1] : vector<8x32xf32> to vector<8xf32>
    %9 = vector.shape_cast %8 : vector<8xf32> to vector<8x1xf32>
    %cst_3 = arith.constant 3.100000e+01 : f32
    %10 = vector.broadcast %cst_3 : f32 to vector<8x1xf32>
    %11 = arith.divf %9, %10 : vector<8x1xf32>
    %c0_4 = arith.constant 0 : index
    %c0_5 = arith.constant 0 : index
    %12 = vector.load %arg1[%c0_4, %c0_5] : memref<1x32xf32, #tpu.memory_space<vmem>>, vector<1x32xf32>
    %13 = vector.broadcast %4 : vector<8x1xf32> to vector<8x32xf32>
    %14 = arith.subf %0, %13 : vector<8x32xf32>
    %15 = vector.broadcast %12 : vector<1x32xf32> to vector<8x32xf32>
    %16 = arith.mulf %15, %14 : vector<8x32xf32>
    %17 = math.sqrt %11 : vector<8x1xf32>
    %cst_6 = arith.constant 9.99999997E-7 : f32
    %18 = vector.broadcast %cst_6 : f32 to vector<8x1xf32>
    %19 = arith.addf %17, %18 : vector<8x1xf32>
    %20 = vector.broadcast %19 : vector<8x1xf32> to vector<8x32xf32>
    %21 = arith.divf %16, %20 : vector<8x32xf32>
    %c0_7 = arith.constant 0 : index
    %c0_8 = arith.constant 0 : index
    %22 = vector.load %arg2[%c0_7, %c0_8] : memref<1x32xf32, #tpu.memory_space<vmem>>, vector<1x32xf32>
    %23 = vector.broadcast %22 : vector<1x32xf32> to vector<8x32xf32>
    %24 = arith.addf %21, %23 : vector<8x32xf32>
    %c0_9 = arith.constant 0 : index
    %c0_10 = arith.constant 0 : index
    %25 = vector.load %arg3[%c0_9, %c0_10] : memref<32x64xf32, #tpu.memory_space<vmem>>, vector<32x64xf32>
    %cst_11 = arith.constant dense<0.000000e+00> : vector<8x64xf32>
    %26 = tpu.matmul %24, %25, %cst_11 {dimension_numbers = #tpu.dot_dimension_numbers<[1], [0], [0], [1], [0, 0, 1, 1], [], []>} : vector<8x32xf32>, vector<32x64xf32>, vector<8x64xf32> -> vector<8x64xf32>
    %c0_12 = arith.constant 0 : index
    %c0_13 = arith.constant 0 : index
    %27 = vector.load %arg4[%c0_12, %c0_13] : memref<1x64xf32, #tpu.memory_space<vmem>>, vector<1x64xf32>
    %28 = vector.broadcast %27 : vector<1x64xf32> to vector<8x64xf32>
    %29 = arith.addf %26, %28 : vector<8x64xf32>
    %30 = vector.extract_strided_slice %29 {offsets = [0, 0], sizes = [8, 32], strides = [1, 1]} : vector<8x64xf32> to vector<8x32xf32>
    %31 = vector.extract_strided_slice %29 {offsets = [0, 32], sizes = [8, 32], strides = [1, 1]} : vector<8x64xf32> to vector<8x32xf32>
    %c0_14 = arith.constant 0 : index
    %c0_15 = arith.constant 0 : index
    %32 = vector.load %arg6[%c0_14, %c0_15] : memref<8x4xf32, #tpu.memory_space<vmem>>, vector<8x4xf32>
    %33 = vector.extract_strided_slice %31 {offsets = [1, 0], sizes = [7, 32], strides = [1, 1]} : vector<8x32xf32> to vector<7x32xf32>
    %34 = vector.extract_strided_slice %31 {offsets = [0, 0], sizes = [1, 32], strides = [1, 1]} : vector<8x32xf32> to vector<1x32xf32>
    %35 = tpu.concatenate %33, %34 in 0 : vector<7x32xf32>, vector<1x32xf32> -> vector<8x32xf32>
    %36 = arith.mulf %30, %35 : vector<8x32xf32>
    %cst_16 = arith.constant dense<0.000000e+00> : vector<8xf32>
    %37 = vector.multi_reduction <add>, %36, %cst_16 [1] : vector<8x32xf32> to vector<8xf32>
    %38 = vector.shape_cast %37 : vector<8xf32> to vector<8x1xf32>
    %cst_17 = arith.constant 3.200000e+01 : f32
    %39 = vector.broadcast %cst_17 : f32 to vector<8x1xf32>
    %40 = arith.divf %38, %39 : vector<8x1xf32>
    %41 = vector.extract_strided_slice %32 {offsets = [0, 0], sizes = [8, 1], strides = [1, 1]} : vector<8x4xf32> to vector<8x1xf32>
    %42 = arith.addf %40, %41 : vector<8x1xf32>
    %43 = vector.extract_strided_slice %31 {offsets = [7, 0], sizes = [1, 32], strides = [1, 1]} : vector<8x32xf32> to vector<1x32xf32>
    %44 = vector.extract_strided_slice %31 {offsets = [0, 0], sizes = [7, 32], strides = [1, 1]} : vector<8x32xf32> to vector<7x32xf32>
    %45 = tpu.concatenate %43, %44 in 0 : vector<1x32xf32>, vector<7x32xf32> -> vector<8x32xf32>
    %46 = arith.mulf %30, %45 : vector<8x32xf32>
    %cst_18 = arith.constant dense<0.000000e+00> : vector<8xf32>
    %47 = vector.multi_reduction <add>, %46, %cst_18 [1] : vector<8x32xf32> to vector<8xf32>
    %48 = vector.shape_cast %47 : vector<8xf32> to vector<8x1xf32>
    %cst_19 = arith.constant 3.200000e+01 : f32
    %49 = vector.broadcast %cst_19 : f32 to vector<8x1xf32>
    %50 = arith.divf %48, %49 : vector<8x1xf32>
    %51 = vector.extract_strided_slice %32 {offsets = [0, 1], sizes = [8, 1], strides = [1, 1]} : vector<8x4xf32> to vector<8x1xf32>
    %52 = arith.addf %50, %51 : vector<8x1xf32>
    %53 = arith.maximumf %42, %52 : vector<8x1xf32>
    %54 = arith.subf %42, %53 : vector<8x1xf32>
    %55 = math.exp %54 : vector<8x1xf32>
    %56 = arith.subf %52, %53 : vector<8x1xf32>
    %57 = math.exp %56 : vector<8x1xf32>
    %58 = arith.addf %55, %57 : vector<8x1xf32>
    %59 = arith.divf %55, %58 : vector<8x1xf32>
    %60 = arith.divf %57, %58 : vector<8x1xf32>
    %61 = vector.shape_cast %59 : vector<8x1xf32> to vector<1x8x1xf32>
    %62 = vector.shape_cast %60 : vector<8x1xf32> to vector<1x8x1xf32>
    %63 = vector.extract_strided_slice %32 {offsets = [0, 2], sizes = [8, 1], strides = [1, 1]} : vector<8x4xf32> to vector<8x1xf32>
    %64 = vector.shape_cast %63 : vector<8x1xf32> to vector<1x8x1xf32>
    %65 = vector.extract_strided_slice %32 {offsets = [0, 3], sizes = [8, 1], strides = [1, 1]} : vector<8x4xf32> to vector<8x1xf32>
    %66 = vector.shape_cast %65 : vector<8x1xf32> to vector<1x8x1xf32>
    %cst_20 = arith.constant 0.000000e+00 : f32
    %67 = vector.broadcast %cst_20 : f32 to vector<1x8x1xf32>
    %68 = arith.cmpf one, %64, %67 : vector<1x8x1xf32>
    %cst_21 = arith.constant 1.250000e-01 : f32
    %69 = vector.broadcast %cst_21 : f32 to vector<1x8x1xf32>
    %70 = arith.select %68, %69, %61 : vector<1x8x1xi1>, vector<1x8x1xf32>
    %cst_22 = arith.constant 0.000000e+00 : f32
    %71 = vector.broadcast %cst_22 : f32 to vector<1x8x1xf32>
    %72 = arith.cmpf one, %64, %71 : vector<1x8x1xf32>
    %cst_23 = arith.constant 1.250000e-01 : f32
    %73 = vector.broadcast %cst_23 : f32 to vector<1x8x1xf32>
    %74 = arith.select %72, %73, %62 : vector<1x8x1xi1>, vector<1x8x1xf32>
    %75 = vector.extract_strided_slice %74 {offsets = [0, 1, 0], sizes = [1, 7, 1], strides = [1, 1, 1]} : vector<1x8x1xf32> to vector<1x7x1xf32>
    %76 = vector.extract_strided_slice %74 {offsets = [0, 0, 0], sizes = [1, 1, 1], strides = [1, 1, 1]} : vector<1x8x1xf32> to vector<1x1x1xf32>
    %77 = tpu.concatenate %75, %76 in 1 : vector<1x7x1xf32>, vector<1x1x1xf32> -> vector<1x8x1xf32>
    %78 = vector.extract_strided_slice %70 {offsets = [0, 7, 0], sizes = [1, 1, 1], strides = [1, 1, 1]} : vector<1x8x1xf32> to vector<1x1x1xf32>
    %79 = vector.extract_strided_slice %70 {offsets = [0, 0, 0], sizes = [1, 7, 1], strides = [1, 1, 1]} : vector<1x8x1xf32> to vector<1x7x1xf32>
    %80 = tpu.concatenate %78, %79 in 1 : vector<1x1x1xf32>, vector<1x7x1xf32> -> vector<1x8x1xf32>
    %81 = arith.mulf %70, %77 : vector<1x8x1xf32>
    %82 = arith.mulf %74, %80 : vector<1x8x1xf32>
    %cst_24 = arith.constant 1.000000e+00 : f32
    %83 = vector.broadcast %cst_24 : f32 to vector<1x8x1xf32>
    %84 = arith.subf %83, %66 : vector<1x8x1xf32>
    %cst_25 = arith.constant 9.99999971E-10 : f32
    %85 = vector.broadcast %cst_25 : f32 to vector<1x8x1xf32>
    %86 = arith.addf %81, %85 : vector<1x8x1xf32>
    %87 = math.sqrt %86 : vector<1x8x1xf32>
    %88 = arith.mulf %84, %87 : vector<1x8x1xf32>
    %89 = arith.addf %66, %88 : vector<1x8x1xf32>
    %90 = tpu.iota {dimensions = array<i32: 1>} : vector<1x8x1xi32>
    %c7_i32 = arith.constant 7 : i32
    %91 = vector.broadcast %c7_i32 : i32 to vector<1x8x1xi32>
    %92 = arith.cmpi slt, %90, %91 : vector<1x8x1xi32>
    %cst_26 = arith.constant 9.99999971E-10 : f32
    %93 = vector.broadcast %cst_26 : f32 to vector<1x8x1xf32>
    %94 = arith.addf %89, %93 : vector<1x8x1xf32>
    %95 = math.log %94 : vector<1x8x1xf32>
    %cst_27 = arith.constant 0.000000e+00 : f32
    %96 = vector.broadcast %cst_27 : f32 to vector<1x8x1xf32>
    %97 = arith.select %92, %95, %96 : vector<1x8x1xi1>, vector<1x8x1xf32>
    %c1_i32 = arith.constant 1 : i32
    %98 = vector.broadcast %c1_i32 : i32 to vector<1x8x1xi32>
    %99 = arith.cmpi sge, %90, %98 : vector<1x8x1xi32>
    %100 = vector.extract_strided_slice %97 {offsets = [0, 7, 0], sizes = [1, 1, 1], strides = [1, 1, 1]} : vector<1x8x1xf32> to vector<1x1x1xf32>
    %101 = vector.extract_strided_slice %97 {offsets = [0, 0, 0], sizes = [1, 7, 1], strides = [1, 1, 1]} : vector<1x8x1xf32> to vector<1x7x1xf32>
    %102 = tpu.concatenate %100, %101 in 1 : vector<1x1x1xf32>, vector<1x7x1xf32> -> vector<1x8x1xf32>
    %cst_28 = arith.constant 0.000000e+00 : f32
    %103 = vector.broadcast %cst_28 : f32 to vector<1x8x1xf32>
    %104 = arith.select %99, %102, %103 : vector<1x8x1xi1>, vector<1x8x1xf32>
    %c1_i32_29 = arith.constant 1 : i32
    %105 = vector.broadcast %c1_i32_29 : i32 to vector<1x8x1xi32>
    %106 = arith.cmpi sge, %90, %105 : vector<1x8x1xi32>
    %107 = vector.extract_strided_slice %104 {offsets = [0, 7, 0], sizes = [1, 1, 1], strides = [1, 1, 1]} : vector<1x8x1xf32> to vector<1x1x1xf32>
    %108 = vector.extract_strided_slice %104 {offsets = [0, 0, 0], sizes = [1, 7, 1], strides = [1, 1, 1]} : vector<1x8x1xf32> to vector<1x7x1xf32>
    %109 = tpu.concatenate %107, %108 in 1 : vector<1x1x1xf32>, vector<1x7x1xf32> -> vector<1x8x1xf32>
    %cst_30 = arith.constant 0.000000e+00 : f32
    %110 = vector.broadcast %cst_30 : f32 to vector<1x8x1xf32>
    %111 = arith.select %106, %109, %110 : vector<1x8x1xi1>, vector<1x8x1xf32>
    %112 = arith.addf %104, %111 : vector<1x8x1xf32>
    %c2_i32 = arith.constant 2 : i32
    %113 = vector.broadcast %c2_i32 : i32 to vector<1x8x1xi32>
    %114 = arith.cmpi sge, %90, %113 : vector<1x8x1xi32>
    %115 = vector.extract_strided_slice %112 {offsets = [0, 6, 0], sizes = [1, 2, 1], strides = [1, 1, 1]} : vector<1x8x1xf32> to vector<1x2x1xf32>
    %116 = vector.extract_strided_slice %112 {offsets = [0, 0, 0], sizes = [1, 6, 1], strides = [1, 1, 1]} : vector<1x8x1xf32> to vector<1x6x1xf32>
    %117 = tpu.concatenate %115, %116 in 1 : vector<1x2x1xf32>, vector<1x6x1xf32> -> vector<1x8x1xf32>
    %cst_31 = arith.constant 0.000000e+00 : f32
    %118 = vector.broadcast %cst_31 : f32 to vector<1x8x1xf32>
    %119 = arith.select %114, %117, %118 : vector<1x8x1xi1>, vector<1x8x1xf32>
    %120 = arith.addf %112, %119 : vector<1x8x1xf32>
    %c4_i32 = arith.constant 4 : i32
    %121 = vector.broadcast %c4_i32 : i32 to vector<1x8x1xi32>
    %122 = arith.cmpi sge, %90, %121 : vector<1x8x1xi32>
    %123 = vector.extract_strided_slice %120 {offsets = [0, 4, 0], sizes = [1, 4, 1], strides = [1, 1, 1]} : vector<1x8x1xf32> to vector<1x4x1xf32>
    %124 = vector.extract_strided_slice %120 {offsets = [0, 0, 0], sizes = [1, 4, 1], strides = [1, 1, 1]} : vector<1x8x1xf32> to vector<1x4x1xf32>
    %125 = tpu.concatenate %123, %124 in 1 : vector<1x4x1xf32>, vector<1x4x1xf32> -> vector<1x8x1xf32>
    %cst_32 = arith.constant 0.000000e+00 : f32
    %126 = vector.broadcast %cst_32 : f32 to vector<1x8x1xf32>
    %127 = arith.select %122, %125, %126 : vector<1x8x1xi1>, vector<1x8x1xf32>
    %128 = arith.addf %120, %127 : vector<1x8x1xf32>
    %129 = tpu.iota {dimensions = array<i32: 0>} : vector<8x8xi32>
    %130 = tpu.iota {dimensions = array<i32: 1>} : vector<8x8xi32>
    %c1_i32_33 = arith.constant 1 : i32
    %131 = vector.broadcast %c1_i32_33 : i32 to vector<8x8xi32>
    %132 = arith.addi %129, %131 : vector<8x8xi32>
    %133 = arith.cmpi eq, %130, %132 : vector<8x8xi32>
    %c1_i32_34 = arith.constant 1 : i32
    %134 = vector.broadcast %c1_i32_34 : i32 to vector<8x8xi32>
    %135 = arith.subi %129, %134 : vector<8x8xi32>
    %136 = arith.cmpi eq, %130, %135 : vector<8x8xi32>
    %137 = arith.cmpi eq, %130, %129 : vector<8x8xi32>
    %cst_35 = arith.constant 0.000000e+00 : f32
    %138 = vector.shape_cast %137 : vector<8x8xi1> to vector<1x8x8xi1>
    %139 = vector.shape_cast %128 : vector<1x8x1xf32> to vector<1x8x1xf32>
    %140 = vector.broadcast %139 : vector<1x8x1xf32> to vector<1x8x8xf32>
    %141 = vector.broadcast %cst_35 : f32 to vector<1x8x8xf32>
    %142 = arith.select %138, %140, %141 : vector<1x8x8xi1>, vector<1x8x8xf32>
    %cst_36 = arith.constant dense<0.000000e+00> : vector<1x8xf32>
    %143 = vector.multi_reduction <add>, %142, %cst_36 [1] : vector<1x8x8xf32> to vector<1x8xf32>
    %144 = vector.shape_cast %143 : vector<1x8xf32> to vector<1x1x8xf32>
    %c0_37 = arith.constant 0 : index
    %c0_38 = arith.constant 0 : index
    %c0_39 = arith.constant 0 : index
    %145 = vector.load %arg7[%c0_37, %c0_38, %c0_39] : memref<1x1x8xf32, #tpu.memory_space<vmem>>, vector<1x1x8xf32>
    %cst_40 = arith.constant 0.000000e+00 : f32
    %146 = vector.shape_cast %133 : vector<8x8xi1> to vector<1x8x8xi1>
    %147 = vector.shape_cast %81 : vector<1x8x1xf32> to vector<1x8x1xf32>
    %148 = vector.broadcast %147 : vector<1x8x1xf32> to vector<1x8x8xf32>
    %149 = vector.broadcast %cst_40 : f32 to vector<1x8x8xf32>
    %150 = arith.select %146, %148, %149 : vector<1x8x8xi1>, vector<1x8x8xf32>
    %cst_41 = arith.constant 0.000000e+00 : f32
    %151 = vector.shape_cast %136 : vector<8x8xi1> to vector<1x8x8xi1>
    %152 = vector.shape_cast %82 : vector<1x8x1xf32> to vector<1x8x1xf32>
    %153 = vector.broadcast %152 : vector<1x8x1xf32> to vector<1x8x8xf32>
    %154 = vector.broadcast %cst_41 : f32 to vector<1x8x8xf32>
    %155 = arith.select %151, %153, %154 : vector<1x8x8xi1>, vector<1x8x8xf32>
    %156 = arith.addf %150, %155 : vector<1x8x8xf32>
    %157 = vector.broadcast %64 : vector<1x8x1xf32> to vector<1x8x8xf32>
    %158 = vector.broadcast %145 : vector<1x1x8xf32> to vector<1x8x8xf32>
    %159 = arith.mulf %157, %158 : vector<1x8x8xf32>
    %cst_42 = arith.constant 0.000000e+00 : f32
    %160 = vector.broadcast %cst_42 : f32 to vector<1x8x8xf32>
    %161 = arith.cmpf ogt, %159, %160 : vector<1x8x8xf32>
    %cst_43 = arith.constant 1.562500e-02 : f32
    %162 = vector.broadcast %cst_43 : f32 to vector<1x8x8xf32>
    %163 = arith.select %161, %162, %156 : vector<1x8x8xi1>, vector<1x8x8xf32>
    %c0_44 = arith.constant 0 : index
    %c0_45 = arith.constant 0 : index
    %c0_46 = arith.constant 0 : index
    %164 = vector.load %arg8[%c0_44, %c0_45, %c0_46] : memref<1x8x8xf32, #tpu.memory_space<vmem>>, vector<1x8x8xf32>
    %cst_47 = arith.constant 1.000000e+00 : f32
    %165 = vector.broadcast %cst_47 : f32 to vector<1x8x8xf32>
    %166 = arith.subf %165, %164 : vector<1x8x8xf32>
    %cst_48 = arith.constant 9.99999971E-10 : f32
    %167 = vector.broadcast %cst_48 : f32 to vector<1x8x8xf32>
    %168 = arith.addf %163, %167 : vector<1x8x8xf32>
    %169 = math.sqrt %168 : vector<1x8x8xf32>
    %170 = arith.mulf %166, %169 : vector<1x8x8xf32>
    %171 = arith.addf %164, %170 : vector<1x8x8xf32>
    %c0_49 = arith.constant 0 : index
    %c0_50 = arith.constant 0 : index
    %c0_51 = arith.constant 0 : index
    %172 = vector.load %arg10[%c0_49, %c0_50, %c0_51] : memref<1x8x8xf32, #tpu.memory_space<vmem>>, vector<1x8x8xf32>
    tpu.vector_store %arg10[%c0_49, %c0_50, %c0_51], %171 {strides = array<i32>} : memref<1x8x8xf32, #tpu.memory_space<vmem>>, vector<1x8x8xf32>,
    %173 = vector.broadcast %144 : vector<1x1x8xf32> to vector<1x8x8xf32>
    %174 = vector.broadcast %128 : vector<1x8x1xf32> to vector<1x8x8xf32>
    %175 = arith.subf %173, %174 : vector<1x8x8xf32>
    %176 = math.absf %175 : vector<1x8x8xf32>
    %cst_52 = arith.constant 0.000000e+00 : f32
    %177 = vector.broadcast %cst_52 : f32 to vector<1x8x8xf32>
    %178 = arith.subf %177, %176 : vector<1x8x8xf32>
    %179 = math.exp %178 : vector<1x8x8xf32>
    %cst_53 = arith.constant 9.99999971E-10 : f32
    %180 = vector.broadcast %cst_53 : f32 to vector<1x8x8xf32>
    %181 = arith.addf %179, %180 : vector<1x8x8xf32>
    %182 = vector.shape_cast %137 : vector<8x8xi1> to vector<1x8x8xi1>
    %183 = arith.select %182, %171, %181 : vector<1x8x8xi1>, vector<1x8x8xf32>
    %c0_54 = arith.constant 0 : index
    %c0_55 = arith.constant 0 : index
    %c0_56 = arith.constant 0 : index
    %184 = vector.load %arg9[%c0_54, %c0_55, %c0_56] : memref<1x8x8xf32, #tpu.memory_space<vmem>>, vector<1x8x8xf32>
    tpu.vector_store %arg9[%c0_54, %c0_55, %c0_56], %183 {strides = array<i32>} : memref<1x8x8xf32, #tpu.memory_space<vmem>>, vector<1x8x8xf32>,
    return
  }
  func.func @transform_0(%arg0: i32) -> (i32, i32) {
    %c0_i32 = arith.constant 0 : i32
    %c0_i32_0 = arith.constant 0 : i32
    %c0_i32_1 = arith.constant 0 : i32
    return %c0_i32, %c0_i32_0 : i32, i32
  }
  func.func @transform_1(%arg0: i32) -> (i32, i32) {
    %c0_i32 = arith.constant 0 : i32
    %c0_i32_0 = arith.constant 0 : i32
    %c0_i32_1 = arith.constant 0 : i32
    return %c0_i32, %c0_i32_0 : i32, i32
  }
  func.func @transform_2(%arg0: i32) -> (i32, i32) {
    %c0_i32 = arith.constant 0 : i32
    %c0_i32_0 = arith.constant 0 : i32
    %c0_i32_1 = arith.constant 0 : i32
    return %c0_i32, %c0_i32_0 : i32, i32
  }
  func.func @transform_3(%arg0: i32) -> (i32, i32) {
    %c0_i32 = arith.constant 0 : i32
    %c0_i32_0 = arith.constant 0 : i32
    %c0_i32_1 = arith.constant 0 : i32
    return %c0_i32, %c0_i32_0 : i32, i32
  }
  func.func @transform_4(%arg0: i32) -> (i32, i32) {
    %c0_i32 = arith.constant 0 : i32
    %c0_i32_0 = arith.constant 0 : i32
    return %arg0, %c0_i32 : i32, i32
  }
  func.func @transform_5(%arg0: i32) -> (i32, i32) {
    %c0_i32 = arith.constant 0 : i32
    %c0_i32_0 = arith.constant 0 : i32
    return %arg0, %c0_i32 : i32, i32
  }
  func.func @transform_6(%arg0: i32) -> (i32, i32, i32) {
    %c0_i32 = arith.constant 0 : i32
    %c0_i32_0 = arith.constant 0 : i32
    %c0_i32_1 = arith.constant 0 : i32
    return %arg0, %c0_i32, %c0_i32_0 : i32, i32, i32
  }
  func.func @transform_7(%arg0: i32) -> (i32, i32, i32) {
    %c0_i32 = arith.constant 0 : i32
    %c0_i32_0 = arith.constant 0 : i32
    %c0_i32_1 = arith.constant 0 : i32
    return %arg0, %c0_i32, %c0_i32_0 : i32, i32, i32
  }
  func.func @transform_8(%arg0: i32) -> (i32, i32, i32) {
    %c0_i32 = arith.constant 0 : i32
    %c0_i32_0 = arith.constant 0 : i32
    %c0_i32_1 = arith.constant 0 : i32
    return %arg0, %c0_i32, %c0_i32_0 : i32, i32, i32
  }
  func.func @transform_9(%arg0: i32) -> (i32, i32, i32) {
    %c0_i32 = arith.constant 0 : i32
    %c0_i32_0 = arith.constant 0 : i32
    %c0_i32_1 = arith.constant 0 : i32
    return %arg0, %c0_i32, %c0_i32_0 : i32, i32, i32
  }
}

</mosaic_0001>

<bundles_post_ra>
// kernel: tpu_custom_call.1
= control target key start
LH: loop header
LB: loop body
LE: loop exit
PB: predicated region body
PF: predicated region fallthrough
CT: control target
= control target key end

     0   :  { %s1759_s0 = inlined_call_operand.hbm [shape: f32[1,32], index: 0, kind: input, shape index: {}]   ;;  %s1760_s1 = inlined_call_operand.hbm [shape: f32[1,32], index: 1, kind: input, shape index: {}]   ;;  %s1761_s2 = inlined_call_operand.hbm [shape: f32[32,64], index: 2, kind: input, shape index: {}]   ;;  %s1762_s3 = inlined_call_operand.hbm [shape: f32[1,64], index: 3, kind: input, shape index: {}]   ;;  %s1763_s4 = inlined_call_operand.vmem [shape: f32[16,32], index: 4, kind: input, shape index: {}]   ;;  %s1764_s5 = inlined_call_operand.vmem [shape: f32[16,4], index: 5, kind: input, shape index: {}]   ;;  %s1765_s6 = inlined_call_operand.hbm [shape: f32[2,1,8], index: 6, kind: input, shape index: {}]   ;;  %s1766_s7 = inlined_call_operand.vmem [shape: f32[2,8,8], index: 7, kind: input, shape index: {}]   ;;  %s1767_s8 = inlined_call_operand.hbm [shape: f32[2,8,8], index: 8, kind: output, shape index: {0}]   ;;  %s1768_s9 = inlined_call_operand.hbm [shape: f32[2,8,8], index: 9, kind: output, shape index: {1}]  }
   0x1   :  { %1773 = sst [smem:[#allocation20_spill]] %s1759_s0 }
   0x2   :  { %1774 = sst [smem:[#allocation21_spill]] %s1760_s1 }
   0x3   :  { %1775 = sst [smem:[#allocation22_spill]] %s1761_s2 }
   0x4   :  { %1776 = sst [smem:[#allocation23_spill]] %s1762_s3 }
   0x5   :  { %15 = vsyncpa [#allocation3], 0 }
   0x6   :  { %16 = vsyncpa [#allocation6], 0 }
   0x7   :  { %17 = vsyncpa [#allocation9], 0 }
   0x8   :  { %18 = vsyncpa [#allocation4], 0 }
   0x9   :  { %20 = vsyncpa [#allocation4 + $0x1], 0 }
   0xa   :  { %21 = vsyncpa [#allocation13], 0 }
   0xb   :  { %23 = vsyncpa [#allocation13 + $0x1], 0  ;;  %s1463_s30 = smov 0   ;;  %s1465_s10 = smov 0  }
   0xc   :  { %s1467_s11 = smov 0   ;;  %s1469_s12 = smov 0  }
   0xd LB: > { %s1396_s13 = smov [#allocation2]   ;;  %s1484_s15 = sadd.s32 4294967295, %s1394_s12   ;;  %s1394_s12 = sphi %s1469_s12, %s1803_s12   ;;  %s1390_s11 = sphi %s1467_s11, %s1802_s11   ;;  %s1386_s10 = sphi %s1465_s10, %s1801_s10   ;;  %s1382_s30 = sphi %s1463_s30, %s1800_s30  }
   0xe   : > { %s287_s14 = sshll.u32 %s1396_s13, 4  ;;  %p986_p0 = scmp.ge.s32.totalorder %s1394_s12, 1  ;;  %s288_s14 = int_to_ptr.vmem [resolvable:$true] %s287_s14 }
   0xf   : > { %p1769_p1 = scmp.eq.s32.totalorder %s1484_s15, 0  ;;  %p274_p2 = scmp.lt.s32.totalorder %s1394_s12, 3 }
  0x10   : > { %s1397_s17 = smov [#allocation5]   ;;  %s1398_s19 = smov [#allocation7]  }
  0x11   : > { %p1489_p3 = pnand %p986_p0, %p274_p2  ;;  %s298_s18 = sshll.u32 %s1397_s17, 4  ;;  %s299_s18 = int_to_ptr.vmem [resolvable:$true] %s298_s18 }
  0x12   : > { %s308_s20 = sshll.u32 %s1398_s19, 4  ;;  %s1167_s22 = scalar_lea.vmem %s288_s14, 16  ;;  %s1502_s20 = int_to_ptr.vmem [resolvable:$true] %s308_s20 }
  0x13   : > { %s1777_s16 = scalar_select %p1489_p3, 1, 0 }
  0x14   : > { %p1053_p5 = pneg %p1489_p3  ;;  %p1168_p8 = scmp.ne.s32.totalorder %s288_s14, %s1167_s22 }
  0x15   : > { %s1174_s23 = scalar_lea.vmem %s288_s14, 32  ;;  %p1175_p11 = scmp.lt.s32.totalorder %s288_s14, %s288_s14 }
  0x16   : > { %p1498_p6 = pnand %p1053_p5, %p1769_p1  ;;  %p1176_p12 = scmp.lt.s32.totalorder %s1174_s23, %s1167_s22 }
  0x18   : > { %p1158_p7 = pneg %p1498_p6  ;;  %p1177_p13 = por %p1176_p12, %p1175_p11 }
  0x1a   : > { %p1170_p9 = pnand %p1168_p8, %p1158_p7 }
  0x1c   : > { %p1171_p10 = pneg %p1170_p9 }
  0x1e   : > { %p1178_p0 = pnand %p1177_p13, %p1171_p10 }
  0x20   : > { %1181 = shalt.err (!%p1178_p0)
}
  0x21   : > { %s1779_s0 = sld [smem:[#allocation20_spill]]  ;;  %s1193_s26 = scalar_lea.vmem %s299_s18, 16 }
  0x22   : > { %p1194_p2 = scmp.ne.s32.totalorder %s299_s18, %s1193_s26  ;;  %s1200_s27 = scalar_lea.vmem %s299_s18, 32 }
  0x23   : > { %p1201_p9 = scmp.lt.s32.totalorder %s299_s18, %s299_s18  ;;  %p1202_p4 = scmp.lt.s32.totalorder %s1200_s27, %s1193_s26 }
  0x24   : > { %p1196_p5 = pnand %p1194_p2, %p1158_p7 }
  0x25   : > { %p1203_p1 = por %p1202_p4, %p1201_p9 }
  0x26   : > { %p1197_p8 = pneg %p1196_p5 }
  0x27   : > { %1056 = dma.hbm_to_vmem [thread:$0]  (!%p1498_p6), %s1779_s0, 16, %s288_s14, [#allocation3]  }
  0x28   : > { %p1204_p11 = pnand %p1203_p1, %p1197_p8 }
  0x2a   : > { %1207 = shalt.err (!%p1204_p11)
}
  0x2b   : > { %s1780_s1 = sld [smem:[#allocation21_spill]]  ;;  %s1219_s13 = scalar_lea.vmem %s1502_s20, 512 }
  0x2c   : > { %p1220_p10 = scmp.ne.s32.totalorder %s1502_s20, %s1219_s13  ;;  %p1227_p4 = scmp.lt.s32.totalorder %s1502_s20, %s1502_s20 }
  0x2d   : > { %p1228_p1 = scmp.lt.s32.totalorder %s1219_s13, %s1219_s13 }
  0x2e   : > { %p1222_p12 = pnand %p1220_p10, %p1158_p7 }
  0x2f   : > { %p1229_p0 = por %p1228_p1, %p1227_p4 }
  0x30   : > { %p1223_p13 = pneg %p1222_p12 }
  0x31   : > { %1059 = dma.hbm_to_vmem [thread:$0]  (!%p1498_p6), %s1780_s1, 16, %s299_s18, [#allocation6]  }
  0x32   : > { %p1230_p2 = pnand %p1229_p0, %p1223_p13 }
  0x34   : > { %1233 = shalt.err (!%p1230_p2)
}
  0x35   : > { %s1399_s14 = smov 128   ;;  %s1400_s17 = smov 8  }
  0x36   : > { %s1781_s2 = sld [smem:[#allocation22_spill]]  ;;  %s1401_s22 = smov [#allocation8]  }
  0x37   : > { %s322_s23 = sshll.u32 %s1401_s22, 4  ;;  %s323_s23 = int_to_ptr.vmem [resolvable:$true] %s322_s23 }
  0x38   : > { %s1245_s24 = scalar_lea.vmem %s323_s23, 16  ;;  %s1252_s25 = scalar_lea.vmem %s323_s23, 32 }
  0x39   : > { %p1246_p5 = scmp.ne.s32.totalorder %s323_s23, %s1245_s24  ;;  %p1253_p11 = scmp.lt.s32.totalorder %s323_s23, %s323_s23 }
  0x3a   : > { %p1254_p10 = scmp.lt.s32.totalorder %s1252_s25, %s1245_s24 }
  0x3b   : > { %p1248_p8 = pnand %p1246_p5, %p1158_p7 }
  0x3c   : > { %1062 = dma.hbm_to_vmem [thread:$0]  (!%p1498_p6), %s1781_s2, 512, %s1502_s20, [#allocation6], %s1399_s14, %s1399_s14, %s1400_s17  }
  0x3d   : > { %p1249_p9 = pneg %p1248_p8  ;;  %p1255_p12 = por %p1254_p10, %p1253_p11 }
  0x3f   : > { %p1256_p13 = pnand %p1255_p12, %p1249_p9 }
  0x41   : > { %1259 = shalt.err (!%p1256_p13)
}
  0x42   : > { %s1782_s3 = sld [smem:[#allocation23_spill]]  ;;  %s985_s20 = sadd.s32 4294967294, %s1394_s12  }
  0x43   : > { %s1545_s21 = sadd.s32 1, %s1394_s12   ;;  %s172_s29 = sadd.s32 1, %s1390_s11 }
  0x44   : > { %s169_s28 = ssub.s32 %s1394_s12, %s1545_s21  ;;  %p179_p4 = scmp.ne.s32.totalorder %s1390_s11, %s1386_s10 }
  0x45   : > { %p170_p7 = scmp.eq.s32.totalorder %s169_s28, 0  ;;  %p180_p1 = scmp.eq.s32.totalorder %s1394_s12, 0 }
  0x46   : > { %p185_p0 = scmp.ne.s32.totalorder %s1386_s10, %s1382_s30  ;;  %p1784_p5 = scmp.eq.s32.totalorder %s1484_s15, 0 }
  0x47   : > { %s1556_s13 = scalar_select %p170_p7, %s1390_s11, %s172_s29  }
  0x48   : > { %1065 = dma.hbm_to_vmem [thread:$0]  (!%p1498_p6), %s1782_s3, 16, %s323_s23, [#allocation9]  }
  0x49   : > { %p1558_p2 = por %p180_p1, %p179_p4  ;;  %p1564_p6 = por %p1784_p5, %p185_p0 }
  0x4a   : > { %p235_p8 = scmp.eq.s32.totalorder %s1484_s15, 1  ;;  %p241_p9 = scmp.eq.s32.totalorder %s985_s20, 1 }
  0x4b   : > { %s1785_s17 = scalar_select %p1564_p6, 1, 0 }
  0x4c   : > { %p1081_p11 = scmp.lt.s32.totalorder %s1394_s12, 2  ;;  %s347_s19 = sand.u32 1, %s1394_s12  }
  0x4d   : > { %p1571_p10 = por %p235_p8, %p179_p4  ;;  %p1575_p12 = por %p241_p9, %p185_p0 }
  0x4e   : > { %s349_s23 = sand.u32 1, %s1390_s11   ;;  %s992_s24 = sshll.u32 %s1394_s12, 4 }
  0x4f   : > { %s1786_s18 = scalar_select %p1571_p10, 1, 0 }
  0x50   : > { %s1787_s22 = scalar_select %p1575_p12, 1, 0 }
  0x51   : > { %s1584_s27 = scalar_lea.hbm %s1765_s6, %s992_s24  ;;  %s350_s20 = scalar_lea.vmem [#allocation10], %s349_s23 }
  0x52   : > { %s357_s28 = sshll.u32 %s350_s20, 4  ;;  %p1588_p13 = pnand %p1081_p11, %p1558_p2  ;;  %s358_s28 = int_to_ptr.vmem [resolvable:$true] %s357_s28 }
  0x53   : > { %s348_s0 = scalar_lea.sflag [#allocation3], %s347_s19  ;;  %s1260_s1 = scalar_lea.hbm %s1584_s27, 16 }
  0x54   : > { %p1261_p7 = scmp.ne.s32.totalorder %s1584_s27, %s1260_s1  ;;  %p1262_p4 = pneg %p1588_p13 }
  0x55   : > { %s1265_s26 = scalar_lea.hbm %s1765_s6, 32  ;;  %p1266_p5 = scmp.lt.s32.totalorder %s1584_s27, %s1765_s6 }
  0x56   : > { %p1263_p1 = pnand %p1262_p4, %p1261_p7  ;;  %p1267_p2 = scmp.lt.s32.totalorder %s1265_s26, %s1260_s1 }
  0x58   : > { %p1264_p0 = pneg %p1263_p1  ;;  %p1268_p8 = por %p1267_p2, %p1266_p5 }
  0x5a   : > { %p1269_p9 = pnand %p1268_p8, %p1264_p0 }
  0x5c   : > { %1272 = shalt.err (!%p1269_p9)
}
  0x5d   : > { %s1273_s14 = scalar_lea.vmem %s358_s28, 16  ;;  %s1402_s19 = smov [#allocation10]  }
  0x5e   : > { %p1274_p11 = scmp.ne.s32.totalorder %s358_s28, %s1273_s14  ;;  %s1278_s2 = sshll.u32 %s1402_s19, 4  ;;  %s1279_s2 = int_to_ptr.vmem [resolvable:$false] %s1278_s2 }
  0x5f   : > { %s1280_s3 = scalar_lea.vmem %s1279_s2, 32  ;;  %p1281_p7 = scmp.lt.s32.totalorder %s358_s28, %s1279_s2 }
  0x60   : > { %p1276_p12 = pnand %p1274_p11, %p1262_p4  ;;  %p1282_p1 = scmp.lt.s32.totalorder %s1280_s3, %s1273_s14 }
  0x62   : > { %p1277_p10 = pneg %p1276_p12  ;;  %p1283_p6 = por %p1282_p1, %p1281_p7 }
  0x64   : > { %p1284_p3 = pnand %p1283_p6, %p1277_p10 }
  0x66   : > { %1287 = shalt.err (!%p1284_p3)
}
  0x67   : > { %1069 = dma.hbm_to_vmem [thread:$0]  (!%p1588_p13), %s1584_s27, 16, %s358_s28, %s348_s0  }
  0x68   : > { %p1789_p0 = scmp.ne.s32.totalorder %s1777_s16, 0 }
  0x69   : > { %p1790_p5 = scmp.eq.s32.totalorder (!%p1789_p0), %s1484_s15, 0 }
  0x6a   : > { %373 = sbr.rel (%p1789_p0) target bundleno = 1898 (0x76a), region = 52 }
  0x6f   : > { %1357 = dma.done.wait (%p1790_p5), [#allocation3], 16   ;;  %p1791_p12 = pmov %p1790_p5 }
  0x70   : > { %p1792_p4 = pmov %p1790_p5 }
  0x71   : > { %1359 = vsyncadd (%p1791_p12), [#allocation3], 4294967280 }
  0x72   : > { %1361 = dma.done.wait (%p1792_p4), [#allocation6], 528   ;;  %p1793_p2 = pmov %p1792_p4 }
  0x74   : > { %1363 = vsyncadd (%p1793_p2), [#allocation6], 4294966768  ;;  %p1794_p3 = pmov %p1793_p2 }
  0x75   : > { %p1795_p6 = pmov %p1793_p2 }
  0x76   : > { %1365 = dma.done.wait (%p1794_p3), [#allocation9], 16  }
  0x77   : > { %1367 = vsyncadd (%p1795_p6), [#allocation9], 4294967280  ;;  %s391_s0 = sand.u32 1, %s1484_s15   ;;  %s1622_s1 = sand.u32 1, %s1386_s10  }
  0x78   : > { %s392_s2 = scalar_lea.sflag [#allocation3], %s391_s0  ;;  %s394_s3 = scalar_lea.vmem [#allocation10], %s1622_s1 }
  0x79   : > { %p1796_p10 = scmp.ne.s32.totalorder %s1785_s17, 0 }
  0x7b   : > { %1369 = dma.done.wait (%p1796_p10), %s392_s2, 16  }
  0x7c   : > { %1371 = vsyncadd (%p1796_p10), %s392_s2, 4294967280  ;;  %p445_p13 = scmp.lt.s32.totalorder %s1484_s15, 1  ;;  %vm458_vm0 = vcmask 261120   ;;  %v500_v7 = vld [vmem:[#allocation7 + $0x18] sm:$0xff]  ;;  %v1403_v8 = vmov 0.0   ;;  %v499_v9 = vld [vmem:[#allocation7 + $0x10] sm:$0xff] }
  0x7d   : > { %1020 = vmatprep.subr.mxu0 %v1403_v8  ;;  %vm1404_vm1 = vmmov 0   ;;  %v498_v10 = vld [vmem:[#allocation7 + $0x8] sm:$0xff]  ;;  %v497_v11 = vld [vmem:[#allocation7] sm:$0xff]  ;;  %v1003_v20 = vld [vmem:[#allocation2] ss:$0 sm:$0xff]  ;;  %s1405_s17 = smov 96  }
  0x7e   : > { %s446_s16 = scalar_select %p445_p13, %s1484_s15, 1  ;;  %1028 = vmatprep.mubr.msk.f32.mxu0 %vm1404_vm1, %v1403_v8  ;;  %1021 = vmatpush3.msra.mxu0 %v500_v7  ;;  %v1004_v23 = vld [vmem:[#allocation5] ss:$0 sm:$0xff]  ;;  %v1005_v26 = vld [vmem:[#allocation8] ss:$0 sm:$0xff]  ;;  %v1409_v59 = vmov 2  }
  0x7f   : > { %1022 = vmatprep.subr.mxu0 %v1403_v8  ;;  %s1406_s20 = smov 127   ;;  %s1407_s14 = smov 1   ;;  %1134 = vset.pattern.permute.xlu1 %v1409_v59  ;;  %vm723_vm12 = vcmask 64512  }
  0x80   : > { %s1631_s27 = sshll.u32 %s446_s16, 3  ;;  %1023 = vmatpush3.msra.mxu0 %v499_v9  ;;  %s1408_s19 = smov 2  }
  0x81   : > { %s448_s24 = scalar_lea.vmem %s1763_s4, %s1631_s27  ;;  %1024 = vmatprep.subr.mxu0 %v1403_v8  ;;  %s452_s23 = scalar_lea.vmem %s1764_s5, %s1631_s27 }
  0x82   : > { %v457_v0 = vld [vmem:[%s448_s24] sm:$0xff]  ;;  %1025 = vmatpush3.msra.mxu0 %v498_v10  ;;  %v1410_v10 = vmov 3   ;;  %s998_s16 = sshll.u32 %s1622_s1, 3  ;;  %s1011_s28 = sshll.u32 %s1484_s15, 7 }
  0x83   : > { %v459_v1 = vsel %vm458_vm0, %v457_v0, 0.0  ;;  %1026 = vmatprep.subr.mxu0 %v1403_v8  ;;  %v581_v38 = vld [vmem:[%s452_s23] sm:$0xff]  ;;  %1133 = vset.pattern.permute.xlu0 %v1410_v10  ;;  %s444_s29 = scalar_lea.vmem [#allocation12], %s998_s16  ;;  %s1681_s25 = scalar_lea.hbm %s1768_s9, %s1011_s28 }
  0x84   : > { %460 = vadd.xlane.f32.xlu0 %v459_v1  ;;  %1027 = vmatpush3.msra.mxu0 %v497_v11  ;;  %vm639_vm4 = vcmp.ne.f32.partialorder %v581_v38, 0.0  ;;  %v660_v11 = vsub.f32 1.0, %v581_v38  ;;  %s812_s24 = sshll.u32 %s444_s29, 4  ;;  %s1685_s26 = scalar_lea.vmem [#allocation11], %s998_s16  ;;  %s1683_s24 = int_to_ptr.vmem [resolvable:$true] %s812_s24 }
  0x85   : > { %s799_s23 = sshll.u32 %s1685_s26, 4  ;;  %p1797_p9 = scmp.ne.s32.totalorder %s1786_s18, 0  ;;  %s800_s23 = int_to_ptr.vmem [resolvable:$true] %s799_s23 }
 0x10d   : > { %v461_v2 = vpop.xlane.xlu0 %460 }
 0x10e   : > { %v463_v3 = vmul.f32 0.03125, %v461_v2 }
 0x110   : > { %v464_v4 = vsub.f32 %v457_v0, %v463_v3 }
 0x112   : > { %v465_v5 = vmul.f32 %v464_v4, %v464_v4  ;;  %v478_v21 = vmul.f32 %v1003_v20, %v464_v4 }
 0x114   : > { %v466_v6 = vsel %vm458_vm0, %v465_v5, 0.0 }
 0x115   : > { %467 = vadd.xlane.f32.xlu0 %v466_v6 }
 0x19e   : > { %v468_v12 = vpop.xlane.xlu0 %467 }
 0x19f   : > { %v470_v13 = vmul.f32 0.032258064, %v468_v12 }
 0x1a1   : > { %1136 = vrsqrt.f32 %v470_v13  ;;  %vm481_vm2 = vcmp.eq.f32.partialorder %v470_v13, inf  ;;  %v484_v16 = vand.u32 2147483648, %v470_v13  ;;  %vm483_vm3 = vcmp.eq.f32.partialorder %v470_v13, 0.0 }
 0x1ae   : > { %v1137_v14 = vpop.eup %1136 }
 0x1af   : > { %v480_v15 = vmul.f32 %v1137_v14, %v470_v13 }
 0x1b1   : > { %v482_v17 = vsel %vm481_vm2, %v470_v13, %v480_v15 }
 0x1b2   : > { %v485_v18 = vsel %vm483_vm3, %v484_v16, %v482_v17  ;;  %v675_v16 = vlaneseq }
 0x1b3   : > { %v486_v19 = vadd.f32 1e-06, %v485_v18 }
 0x1b4   : > { %v1650_v17 = vshrl.u32 %v675_v16, 7 }
 0x1b5   : > { %1138 = vrcp.f32 %v486_v19 }
 0x1b6   : > { %vm677_vm7 = vcmp.lt.s32.totalorder %v1650_v17, 7  ;;  %vm682_vm8 = vcmp.ge.s32.totalorder %v1650_v17, 1  ;;  %vm694_vm9 = vcmp.ge.s32.totalorder %v1650_v17, 2  ;;  %vm702_vm10 = vcmp.ge.s32.totalorder %v1650_v17, 4 }
 0x1c2   : > { %v1139_v22 = vpop.eup %1138 }
 0x1c3   : > { %v488_v24 = vmul.f32 %v1139_v22, %v478_v21 }
 0x1c5   : > { %v496_v25 = vadd.f32 %v1004_v23, %v488_v24 }
 0x1c7   : > { %1029 = vmatmul.mubr.msk.f32.vlgmr.msra.gmra.mxu0 %vm458_vm0, %v496_v25 }
 0x287   : > { %v577_v27 = vpop.f32.mrf.mxu0 }
 0x288   : > { %v578_v28 = vadd.f32 %v1005_v26, %v577_v27 }
 0x289   : > { %v1030_v29 = vpop.f32.mrf.mxu0 }
 0x28a   : > { %v597_v30 = vrot.slane %v578_v28, 7  ;;  %v583_v31 = vrot.slane %v578_v28, 1 }
 0x28c   : > { %602 = vrot.lane.b32.xlu1 %v597_v30, %s1405_s17 }
 0x290   : > { %588 = vrot.lane.b32.xlu1 %v583_v31, %s1405_s17 }
 0x2fe   : > { %v603_v32 = vpop.permute.xlu1 %602 }
 0x2ff   : > { %v605_v33 = vmul.f32 %v603_v32, %v578_v28 }
 0x301   : > { %v606_v34 = vsel %vm458_vm0, %v605_v33, 0.0 }
 0x302   : > { %607 = vadd.xlane.f32.xlu0 %v606_v34  ;;  %v589_v35 = vpop.permute.xlu1 %588 }
 0x303   : > { %v591_v36 = vmul.f32 %v589_v35, %v578_v28  ;;  %v1656_v35 = vand.u32 127, %v675_v16 }
 0x305   : > { %v592_v37 = vsel %vm458_vm0, %v591_v36, 0.0  ;;  %vm716_vm11 = vcmp.eq.s32.totalorder %v1656_v35, %v1650_v17  ;;  %v712_v36 = vadd.s32 1, %v1650_v17 }
 0x306   : > { %593 = vadd.xlane.f32.xlu1 %v592_v37  ;;  %v1008_v37 = vld [vmem:[%s394_s3] ss:$0 sm:$0xff]  ;;  %s456_s3 = scalar_lea.vmem %s1766_s7, %s1631_s27 }
 0x307   : > { %vm713_vm13 = vcmp.eq.s32.totalorder %v1656_v35, %v712_v36 }
 0x38b   : > { %v608_v39 = vpop.xlane.xlu0 %607 }
 0x38c   : > { %v609_v40 = vmul.f32 0.03125, %v608_v39  ;;  %v1007_v39 = vadd.s32 4294967295, %v1650_v17 }
 0x38e   : > { %v610_v41 = vadd.f32 %v609_v40, %v581_v38  ;;  %vm715_vm14 = vcmp.eq.s32.totalorder %v1656_v35, %v1007_v39 }
 0x38f   : > { %v594_v42 = vpop.xlane.xlu1 %593 }
 0x390   : > { %612 = vrot.lane.b32.xlu0 %v610_v41, %s1406_s20  ;;  %v595_v43 = vmul.f32 0.03125, %v594_v42 }
 0x392   : > { %v596_v44 = vadd.f32 %v595_v43, %v581_v38 }
 0x402   : > { %v613_v45 = vpop.permute.xlu0 %612 }
 0x403   : > { %v615_v46 = vmax.f32 %v596_v44, %v613_v45 }
 0x405   : > { %v616_v47 = vsub.f32 %v596_v44, %v615_v46  ;;  %620 = vrot.lane.b32.xlu0 %v615_v46, %s1407_s14 }
 0x407   : > { %v617_v52 = vmul.f32 1.442695, %v616_v47 }
 0x477   : > { %v621_v48 = vpop.permute.xlu0 %620 }
 0x478   : > { %v623_v49 = vsub.f32 %v610_v41, %v621_v48 }
 0x47a   : > { %v624_v50 = vmul.f32 1.442695, %v623_v49 }
 0x47c   : > { %1140 = vpow2.f32 %v624_v50 }
 0x47d   : > { %1142 = vpow2.f32 %v617_v52 }
 0x489   : > { %v1141_v51 = vpop.eup %1140 }
 0x48a   : > { %627 = vrot.lane.b32.xlu0 %v1141_v51, %s1406_s20  ;;  %v1143_v53 = vpop.eup %1142  ;;  %s786_s20 = scalar_lea.sflag [#allocation13], %s1622_s1 }
 0x4fc   : > { %v628_v54 = vpop.permute.xlu0 %627 }
 0x4fd   : > { %v630_v55 = vadd.f32 %v1143_v53, %v628_v54 }
 0x4ff   : > { %1144 = vrcp.f32 %v630_v55  ;;  %634 = vrot.lane.b32.xlu0 %v630_v55, %s1407_s14 }
 0x50c   : > { %v1145_v56 = vpop.eup %1144 }
 0x50d   : > { %v632_v57 = vmul.f32 %v1145_v56, %v1143_v53 }
 0x50f   : > { %641 = vrot.lane.b32.xlu0 %v632_v57, %s1408_s19  ;;  %s1411_s19 = smov [#allocation12]  }
 0x510   : > { %s1292_s0 = sshll.u32 %s1411_s19, 4  ;;  %s1293_s0 = int_to_ptr.vmem [resolvable:$false] %s1292_s0 }
 0x511   : > { %s1294_s2 = scalar_lea.vmem %s1293_s0, 256  ;;  %p1295_p1 = scmp.lt.s32.totalorder %s1683_s24, %s1293_s0 }
 0x571   : > { %v635_v58 = vpop.permute.xlu0 %634 }
 0x572   : > { %1146 = vrcp.f32 %v635_v58 }
 0x57f   : > { %v1147_v60 = vpop.eup %1146 }
 0x580   : > { %v638_v61 = vmul.f32 %v1147_v60, %v1141_v51  ;;  %v759_v60 = vld [vmem:[%s456_s3] sm:$0xff] }
 0x581   : > { %v642_v62 = vpop.permute.xlu0 %641 }
 0x582   : > { %646 = vrot.lane.b32.xlu1 %v638_v61, %s1407_s14  ;;  %v644_v2 = vsel %vm639_vm4, 0.125, %v642_v62  ;;  %v760_v62 = vsub.f32 1.0, %v759_v60 }
 0x583   : > { %v655_v32 = vrot.slane %v644_v2, 7 }
 0x5f4   : > { %v647_v63 = vpop.permute.xlu1 %646 }
 0x5f5   : > { %v649_v0 = vsel %vm639_vm4, 0.125, %v647_v63 }
 0x5f6   : > { %v651_v1 = vrot.slane %v649_v0, 1  ;;  %v659_v33 = vmul.f32 %v655_v32, %v649_v0 }
 0x5f8   : > { %v658_v3 = vmul.f32 %v651_v1, %v644_v2 }
 0x5fa   : > { %v661_v4 = vadd.f32 1e-09, %v658_v3  ;;  %734 = vperm.xlu1 %1134, %v658_v3  }
 0x5fc   : > { %1148 = vrsqrt.f32 %v661_v4  ;;  %vm664_vm5 = vcmp.eq.f32.partialorder %v661_v4, inf  ;;  %v667_v7 = vand.u32 2147483648, %v661_v4  ;;  %vm666_vm6 = vcmp.eq.f32.partialorder %v661_v4, 0.0 }
 0x5fe   : > { %747 = vperm.xlu1 %1134, %v581_v38  }
 0x609   : > { %v1149_v5 = vpop.eup %1148 }
 0x60a   : > { %v663_v6 = vmul.f32 %v1149_v5, %v661_v4 }
 0x60c   : > { %v665_v8 = vsel %vm664_vm5, %v661_v4, %v663_v6 }
 0x60d   : > { %v668_v9 = vsel %vm666_vm6, %v667_v7, %v665_v8 }
 0x60e   : > { %670 = vrot.lane.b32.xlu0 %v668_v9, %s1407_s14  ;;  %s1288_s14 = scalar_lea.vmem %s1683_s24, 128 }
 0x60f   : > { %p1289_p8 = scmp.ne.s32.totalorder %s1683_s24, %s1288_s14  ;;  %p1296_p0 = scmp.lt.s32.totalorder %s1294_s2, %s1288_s14 }
 0x611   : > { %p1290_p11 = pnand %p1289_p8, %p1797_p9  ;;  %p1297_p5 = por %p1296_p0, %p1295_p1 }
 0x613   : > { %p1291_p7 = pneg %p1290_p11 }
 0x615   : > { %p1298_p12 = pnand %p1297_p5, %p1291_p7 }
 0x675   : > { %v735_v34 = vpop.permute.xlu1 %734 }
 0x676   : > { %v737_v47 = vsel %vm713_vm13, %v735_v34, 0.0 }
 0x680   : > { %v671_v12 = vpop.permute.xlu0 %670 }
 0x681   : > { %v673_v13 = vmul.f32 %v671_v12, %v660_v11 }
 0x683   : > { %v674_v14 = vadd.f32 %v673_v13, %v581_v38  ;;  %v748_v38 = vpop.permute.xlu1 %747 }
 0x684   : > { %v756_v43 = vmul.f32 %v1008_v37, %v748_v38 }
 0x685   : > { %v678_v15 = vadd.f32 1e-09, %v674_v14 }
 0x686   : > { %vm757_vm15 = vcmp.gt.f32.partialorder %v756_v43, 0.0 }
 0x687   : > { %1150 = vlog2.f32 %v678_v15 }
 0x694   : > { %v1151_v18 = vpop.eup %1150 }
 0x695   : > { %v680_v19 = vmul.f32 0.6931472, %v1151_v18 }
 0x697   : > { %v681_v20 = vsel %vm677_vm7, %v680_v19, 0.0 }
 0x698   : > { %v684_v21 = vrot.slane %v681_v20, 7 }
 0x69a   : > { %v687_v22 = vsel %vm682_vm8, %v684_v21, 0.0 }
 0x69b   : > { %v689_v23 = vrot.slane %v687_v22, 7 }
 0x69d   : > { %v692_v24 = vsel %vm682_vm8, %v689_v23, 0.0 }
 0x69e   : > { %v693_v25 = vadd.f32 %v692_v24, %v687_v22 }
 0x6a0   : > { %v696_v26 = vrot.slane %v693_v25, 6 }
 0x6a2   : > { %v700_v27 = vsel %vm694_vm9, %v696_v26, 0.0 }
 0x6a3   : > { %v701_v28 = vadd.f32 %v700_v27, %v693_v25 }
 0x6a5   : > { %v704_v29 = vrot.slane %v701_v28, 4 }
 0x6a7   : > { %v708_v30 = vsel %vm702_vm10, %v704_v29, 0.0 }
 0x6a8   : > { %v709_v31 = vadd.f32 %v708_v30, %v701_v28 }
 0x6aa   : > { %719 = vperm.xlu0 %1133, %v709_v31  }
 0x6ae   : > { %1135 = vset.pattern.permute.xlu0 %v1409_v59 }
 0x6af   : > { %740 = vperm.xlu0 %1135, %v659_v33  }
 0x725   : > { %v720_v40 = vpop.permute.xlu0 %719 }
 0x726   : > { %v722_v41 = vsel %vm716_vm11, %v720_v40, 0.0 }
 0x727   : > { %v724_v42 = vsel %vm723_vm12, %v722_v41, 0.0 }
 0x728   : > { %v725_v44 = vrot.slane %v724_v42, 4 }
 0x72a   : > { %v726_v45 = vadd.f32 %v725_v44, %v724_v42  ;;  %v741_v46 = vpop.permute.xlu0 %740 }
 0x72b   : > { %v743_v48 = vsel %vm715_vm14, %v741_v46, 0.0 }
 0x72c   : > { %v727_v49 = vrot.slane %v726_v45, 2  ;;  %v744_v50 = vadd.f32 %v743_v48, %v737_v47 }
 0x72e   : > { %v728_v51 = vadd.f32 %v727_v49, %v726_v45  ;;  %v758_v52 = vsel %vm757_vm15, 0.015625, %v744_v50 }
 0x72f   : > { %v761_v53 = vadd.f32 1e-09, %v758_v52 }
 0x730   : > { %v729_v54 = vrot.slane %v728_v51, 1 }
 0x731   : > { %1152 = vrsqrt.f32 %v761_v53  ;;  %vm764_vm0 = vcmp.eq.f32.partialorder %v761_v53, inf  ;;  %v767_v0 = vand.u32 2147483648, %v761_v53  ;;  %vm766_vm1 = vcmp.eq.f32.partialorder %v761_v53, 0.0 }
 0x732   : > { %v730_v55 = vadd.f32 %v729_v54, %v728_v51 }
 0x734   : > { %v772_v56 = vsub.f32 %v730_v55, %v720_v40 }
 0x736   : > { %v773_v57 = vand.u32 2147483647, %v772_v56 }
 0x738   : > { %v774_v58 = vsub.f32 0.0, %v773_v57 }
 0x73a   : > { %v775_v59 = vmul.f32 1.442695, %v774_v58 }
 0x73c   : > { %1154 = vpow2.f32 %v775_v59 }
 0x73e   : > { %v1153_v61 = vpop.eup %1152 }
 0x73f   : > { %v763_v63 = vmul.f32 %v1153_v61, %v761_v53 }
 0x741   : > { %v765_v1 = vsel %vm764_vm0, %v761_v53, %v763_v63 }
 0x742   : > { %v768_v2 = vsel %vm766_vm1, %v767_v0, %v765_v1 }
 0x743   : > { %v769_v3 = vmul.f32 %v768_v2, %v760_v62 }
 0x745   : > { %v770_v4 = vadd.f32 %v769_v3, %v759_v60 }
 0x747   : > { %771 = vst.msk [vmem:[%s444_s29] sm:$0xff] %vm723_vm12, %v770_v4 }
 0x748   : > { %1301 = shalt.err (!%p1298_p12)
}
 0x749   : > { %s1302_s3 = scalar_lea.hbm %s1681_s25, 128  ;;  %s1306_s27 = scalar_lea.hbm %s1768_s9, 256 }
 0x74a   : > { %p1303_p4 = scmp.ne.s32.totalorder %s1681_s25, %s1302_s3  ;;  %p1307_p6 = scmp.lt.s32.totalorder %s1681_s25, %s1768_s9 }
 0x74b   : > { %p1308_p10 = scmp.lt.s32.totalorder %s1306_s27, %s1302_s3 }
 0x74c   : > { %p1304_p2 = pnand %p1303_p4, %p1797_p9 }
 0x74d   : > { %p1309_p13 = por %p1308_p10, %p1307_p6 }
 0x74e   : > { %p1305_p3 = pneg %p1304_p2 }
 0x750   : > { %p1310_p8 = pnand %p1309_p13, %p1305_p3 }
 0x752   : > { %1313 = shalt.err (!%p1310_p8)
}
 0x753   : > { %1050 = dma.vmem_to_hbm [thread:$0]  (%p1797_p9), %s1683_s24, 128, %s1681_s25, %s786_s20   ;;  %v1155_v5 = vpop.eup %1154 }
 0x754   : > { %v777_v6 = vadd.f32 1e-09, %v1155_v5  ;;  %s1715_s2 = scalar_lea.hbm %s1767_s8, %s1011_s28  ;;  %s781_s3 = scalar_lea.sflag [#allocation4], %s1622_s1 }
 0x755   : > { %s1314_s16 = scalar_lea.vmem %s800_s23, 128  ;;  %s1412_s15 = smov [#allocation11]  }
 0x756   : > { %v778_v7 = vsel %vm716_vm11, %v770_v4, %v777_v6  ;;  %p1315_p11 = scmp.ne.s32.totalorder %s800_s23, %s1314_s16  ;;  %s1318_s24 = sshll.u32 %s1412_s15, 4  ;;  %s1319_s24 = int_to_ptr.vmem [resolvable:$false] %s1318_s24 }
 0x757   : > { %779 = vst.msk [vmem:[%s1685_s26] sm:$0xff] %vm723_vm12, %v778_v7  ;;  %s1320_s25 = scalar_lea.vmem %s1319_s24, 256  ;;  %p1321_p0 = scmp.lt.s32.totalorder %s800_s23, %s1319_s24 }
 0x758   : > { %p1316_p7 = pnand %p1315_p11, %p1797_p9  ;;  %p1322_p5 = scmp.lt.s32.totalorder %s1320_s25, %s1314_s16 }
 0x75a   : > { %p1317_p1 = pneg %p1316_p7  ;;  %p1323_p12 = por %p1322_p5, %p1321_p0 }
 0x75c   : > { %p1324_p4 = pnand %p1323_p12, %p1317_p1 }
 0x75e   : > { %1327 = shalt.err (!%p1324_p4)
}
 0x75f   : > { %s1328_s28 = scalar_lea.hbm %s1715_s2, 128  ;;  %s1332_s20 = scalar_lea.hbm %s1767_s8, 256 }
 0x760   : > { %p1329_p2 = scmp.ne.s32.totalorder %s1715_s2, %s1328_s28  ;;  %p1333_p10 = scmp.lt.s32.totalorder %s1715_s2, %s1767_s8 }
 0x761   : > { %p1334_p13 = scmp.lt.s32.totalorder %s1332_s20, %s1328_s28 }
 0x762   : > { %p1330_p3 = pnand %p1329_p2, %p1797_p9 }
 0x763   : > { %p1335_p8 = por %p1334_p13, %p1333_p10 }
 0x764   : > { %p1331_p6 = pneg %p1330_p3 }
 0x766   : > { %p1336_p11 = pnand %p1335_p8, %p1331_p6 }
 0x768   : > { %1339 = shalt.err (!%p1336_p11)
}
 0x769   : > { %1049 = dma.vmem_to_hbm [thread:$0]  (%p1797_p9), %s800_s23, 128, %s1715_s2, %s781_s3  }
 0x76a PF: > { %s824_s17 = sand.u32 1, %s1382_s30   ;;  %p1798_p7 = scmp.ne.s32.totalorder %s1787_s22, 0 }
 0x76b   : > { %p1799_p1 = scmp.ge.s32.totalorder %s1394_s12, 2  ;;  %s825_s19 = scalar_lea.sflag [#allocation4], %s824_s17 }
 0x76d   : > { %p1071_p0 = pnand %p1799_p1, %p1798_p7 }
 0x76f   : > { %p1072_p5 = pneg %p1071_p0 }
 0x771   : > { %1373 = dma.done.wait (%p1072_p5), %s825_s19, 128  }
 0x772   : > { %1375 = vsyncadd (%p1072_p5), %s825_s19, 4294967168  ;;  %s834_s14 = scalar_lea.sflag [#allocation13], %s824_s17 }
 0x773   : > { %1377 = dma.done.wait (%p1072_p5), %s834_s14, 128  }
 0x774   : > { %1379 = vsyncadd (%p1072_p5), %s834_s14, 4294967168  ;;  %p26_p9 = scmp.ge.s32.totalorder %s1545_s21, 4   ;;  %s1800_s30 = smov %s1386_s10 }
 0x775   : > { %s1801_s10 = smov %s1390_s11  ;;  %s1802_s11 = smov %s1556_s13 }
 0x776   : > { %s1803_s12 = smov %s1545_s21  ;;  %28 = sbr.rel (!%p26_p9) target bundleno = 13 (0xd), region = 138 }
 0x77b   :  { %839 = vsyncpa [#allocation3], 1 }
 0x77c   :  { %841 = vsyncpa [#allocation3 + $0x1], 1 }
 0x77d   :  { %842 = vsyncpa [#allocation6], 1 }
 0x77e   :  { %843 = vsyncpa [#allocation9], 1 }
 0x77f   :  { %844 = vsyncpa [#allocation4], 1 }
 0x780   :  { %846 = vsyncpa [#allocation4 + $0x1], 1 }
 0x781   :  { %847 = vsyncpa [#allocation13], 1 }
 0x782   :  { %849 = vsyncpa [#allocation13 + $0x1], 1 }

</bundles_post_ra>
